<compile_context>
chip_gen: v6e
topology: v6e:2x2x1
jax: 0.10.0
libtpu: 0.0.40
codegen_flags: <defaults>
</compile_context>

<pallas_src>
import math

import jax
import jax.numpy as jnp
from jax.experimental import pallas as pl
from jax.experimental.pallas import tpu as pltpu


def _self_attention_kernel(x_ref, wq_ref, wk_ref, wv_ref,
                           bq_ref, bk_ref, bv_ref, o_ref):
    """Fused self-attention for one batch element.

    x_ref  : (1, S, D) VMEM tile of the input.
    w*_ref : (D, D) projection matrices (already transposed: y = x @ W + b).
    b*_ref : (1, D) biases.
    o_ref  : (1, S, D) output tile.
    """
    x = x_ref[0].astype(jnp.float32)                                   # (S, D)
    wq = wq_ref[...].astype(jnp.float32)
    wk = wk_ref[...].astype(jnp.float32)
    wv = wv_ref[...].astype(jnp.float32)

    q = jnp.dot(x, wq, preferred_element_type=jnp.float32) + bq_ref[...].astype(jnp.float32)
    k = jnp.dot(x, wk, preferred_element_type=jnp.float32) + bk_ref[...].astype(jnp.float32)
    v = jnp.dot(x, wv, preferred_element_type=jnp.float32) + bv_ref[...].astype(jnp.float32)

    scale = 1.0 / math.sqrt(x_ref.shape[-1])
    s = jnp.dot(q, k.T, preferred_element_type=jnp.float32) * scale    # (S, S)

    # Numerically-stable softmax over the last axis (matches nn.Softmax(dim=-1)).
    m = jnp.max(s, axis=-1, keepdims=True)
    p = jnp.exp(s - m)
    p = p / jnp.sum(p, axis=-1, keepdims=True)

    out = jnp.dot(p, v, preferred_element_type=jnp.float32)            # (S, D)
    o_ref[0] = out.astype(o_ref.dtype)                                 # single cast on store


def self_attention(x, wq, wk, wv, bq, bk, bv):
    """x: (B, S, D). w*: (D, D) in `y = x @ w + b` convention
    (i.e. the TRANSPOSE of torch.nn.Linear.weight). b*: (D,)."""
    B, S, D = x.shape
    bq2 = bq.reshape(1, D)
    bk2 = bk.reshape(1, D)
    bv2 = bv.reshape(1, D)

    # Constant block index across the batch grid -> weights/biases stay resident
    # in VMEM for the whole (sequential-per-core) batch loop.
    weight_spec = pl.BlockSpec((D, D), lambda b: (0, 0))
    bias_spec = pl.BlockSpec((1, D), lambda b: (0, 0))

    return pl.pallas_call(
        _self_attention_kernel,
        out_shape=jax.ShapeDtypeStruct((B, S, D), x.dtype),
        grid_spec=pltpu.PrefetchScalarGridSpec(
            num_scalar_prefetch=0,
            grid=(B,),                                          # one batch element / step
            in_specs=[
                pl.BlockSpec((1, S, D), lambda b: (b, 0, 0)),   # x tile
                weight_spec, weight_spec, weight_spec,          # Wq, Wk, Wv
                bias_spec, bias_spec, bias_spec,                # bq, bk, bv
            ],
            out_specs=pl.BlockSpec((1, S, D), lambda b: (b, 0, 0)),
        ),
        compiler_params=pltpu.CompilerParams(
            # Independent batch steps; on v7x this shards across the 2 TensorCores.
            dimension_semantics=("parallel",),
        ),
    )(x, wq, wk, wv, bq2, bk2, bv2)


def _reference(x, wq, wk, wv, bq, bk, bv):
    """Pure-JAX reference matching the PyTorch forward."""
    q = x @ wq + bq
    k = x @ wk + bk
    v = x @ wv + bv
    s = q @ jnp.swapaxes(k, -2, -1) / math.sqrt(x.shape[-1])
    p = jax.nn.softmax(s, axis=-1)
    return p @ v


if __name__ == "__main__":
    key = jax.random.PRNGKey(0)
    B, S, D = 2, 8, 32  # batch, seq_len, dim
    kx, kq, kk, kv, kbq, kbk, kbv = jax.random.split(key, 7)

    init = 1.0 / math.sqrt(D)
    x = jax.random.normal(kx, (B, S, D), dtype=jnp.float32)
    wq = jax.random.normal(kq, (D, D), dtype=jnp.float32) * init
    wk = jax.random.normal(kk, (D, D), dtype=jnp.float32) * init
    wv = jax.random.normal(kv, (D, D), dtype=jnp.float32) * init
    bq = jax.random.normal(kbq, (D,), dtype=jnp.float32) * init
    bk = jax.random.normal(kbk, (D,), dtype=jnp.float32) * init
    bv = jax.random.normal(kbv, (D,), dtype=jnp.float32) * init

    out = self_attention(x, wq, wk, wv, bq, bk, bv)
    out = jax.block_until_ready(out)

    ref = _reference(x, wq, wk, wv, bq, bk, bv)
    assert out.shape == (B, S, D)
    assert jnp.allclose(out, ref, atol=1e-5, rtol=1e-5), "mismatch vs reference"
    print("KERNEL_OK")
</pallas_src>

<mosaic_0001>
module attributes {stable_mosaic.version = 11 : i64} {
  func.func @_self_attention_kernel(%arg0: i32, %arg1: memref<1x8x32xf32, #tpu.memory_space<vmem>>, %arg2: memref<32x32xf32, #tpu.memory_space<vmem>>, %arg3: memref<32x32xf32, #tpu.memory_space<vmem>>, %arg4: memref<32x32xf32, #tpu.memory_space<vmem>>, %arg5: memref<1x32xf32, #tpu.memory_space<vmem>>, %arg6: memref<1x32xf32, #tpu.memory_space<vmem>>, %arg7: memref<1x32xf32, #tpu.memory_space<vmem>>, %arg8: memref<1x8x32xf32, #tpu.memory_space<vmem>>) attributes {dimension_semantics = [#tpu.dimension_semantics<parallel>], iteration_bounds = array<i64: 2>, scalar_prefetch = 0 : i64, scratch_operands = 0 : i64, tpu.core_type = #tpu.core_type<tc>, window_params = [{transform_indices = @transform_0, window_bounds = array<i64: 1, 8, 32>}, {pipeline_mode = #tpu.pipeline_mode<synchronous>, transform_indices = @transform_1, window_bounds = array<i64: 32, 32>}, {pipeline_mode = #tpu.pipeline_mode<synchronous>, transform_indices = @transform_2, window_bounds = array<i64: 32, 32>}, {pipeline_mode = #tpu.pipeline_mode<synchronous>, transform_indices = @transform_3, window_bounds = array<i64: 32, 32>}, {pipeline_mode = #tpu.pipeline_mode<synchronous>, transform_indices = @transform_4, window_bounds = array<i64: 1, 32>}, {pipeline_mode = #tpu.pipeline_mode<synchronous>, transform_indices = @transform_5, window_bounds = array<i64: 1, 32>}, {pipeline_mode = #tpu.pipeline_mode<synchronous>, transform_indices = @transform_6, window_bounds = array<i64: 1, 32>}, {transform_indices = @transform_7, window_bounds = array<i64: 1, 8, 32>}]} {
    %c0 = arith.constant 0 : index
    %c0_0 = arith.constant 0 : index
    %c0_1 = arith.constant 0 : index
    %0 = vector.load %arg1[%c0, %c0_0, %c0_1] : memref<1x8x32xf32, #tpu.memory_space<vmem>>, vector<1x8x32xf32>
    %1 = vector.shape_cast %0 : vector<1x8x32xf32> to vector<8x32xf32>
    %c0_2 = arith.constant 0 : index
    %c0_3 = arith.constant 0 : index
    %2 = vector.load %arg2[%c0_2, %c0_3] : memref<32x32xf32, #tpu.memory_space<vmem>>, vector<32x32xf32>
    %c0_4 = arith.constant 0 : index
    %c0_5 = arith.constant 0 : index
    %3 = vector.load %arg3[%c0_4, %c0_5] : memref<32x32xf32, #tpu.memory_space<vmem>>, vector<32x32xf32>
    %c0_6 = arith.constant 0 : index
    %c0_7 = arith.constant 0 : index
    %4 = vector.load %arg4[%c0_6, %c0_7] : memref<32x32xf32, #tpu.memory_space<vmem>>, vector<32x32xf32>
    %cst = arith.constant dense<0.000000e+00> : vector<8x32xf32>
    %5 = tpu.matmul %1, %2, %cst {dimension_numbers = #tpu.dot_dimension_numbers<[1], [0], [0], [1], [0, 0, 1, 1], [], []>} : vector<8x32xf32>, vector<32x32xf32>, vector<8x32xf32> -> vector<8x32xf32>
    %c0_8 = arith.constant 0 : index
    %c0_9 = arith.constant 0 : index
    %6 = vector.load %arg5[%c0_8, %c0_9] : memref<1x32xf32, #tpu.memory_space<vmem>>, vector<1x32xf32>
    %7 = vector.broadcast %6 : vector<1x32xf32> to vector<8x32xf32>
    %8 = arith.addf %5, %7 : vector<8x32xf32>
    %cst_10 = arith.constant dense<0.000000e+00> : vector<8x32xf32>
    %9 = tpu.matmul %1, %3, %cst_10 {dimension_numbers = #tpu.dot_dimension_numbers<[1], [0], [0], [1], [0, 0, 1, 1], [], []>} : vector<8x32xf32>, vector<32x32xf32>, vector<8x32xf32> -> vector<8x32xf32>
    %c0_11 = arith.constant 0 : index
    %c0_12 = arith.constant 0 : index
    %10 = vector.load %arg6[%c0_11, %c0_12] : memref<1x32xf32, #tpu.memory_space<vmem>>, vector<1x32xf32>
    %11 = vector.broadcast %10 : vector<1x32xf32> to vector<8x32xf32>
    %12 = arith.addf %9, %11 : vector<8x32xf32>
    %cst_13 = arith.constant dense<0.000000e+00> : vector<8x32xf32>
    %13 = tpu.matmul %1, %4, %cst_13 {dimension_numbers = #tpu.dot_dimension_numbers<[1], [0], [0], [1], [0, 0, 1, 1], [], []>} : vector<8x32xf32>, vector<32x32xf32>, vector<8x32xf32> -> vector<8x32xf32>
    %c0_14 = arith.constant 0 : index
    %c0_15 = arith.constant 0 : index
    %14 = vector.load %arg7[%c0_14, %c0_15] : memref<1x32xf32, #tpu.memory_space<vmem>>, vector<1x32xf32>
    %15 = vector.broadcast %14 : vector<1x32xf32> to vector<8x32xf32>
    %16 = arith.addf %13, %15 : vector<8x32xf32>
    %17 = tpu.transpose %12, [1, 0] : vector<8x32xf32> -> vector<32x8xf32>
    %cst_16 = arith.constant dense<0.000000e+00> : vector<8x8xf32>
    %18 = tpu.matmul %8, %17, %cst_16 {dimension_numbers = #tpu.dot_dimension_numbers<[1], [0], [0], [1], [0, 0, 1, 1], [], []>} : vector<8x32xf32>, vector<32x8xf32>, vector<8x8xf32> -> vector<8x8xf32>
    %cst_17 = arith.constant 0.176776692 : f32
    %19 = vector.broadcast %cst_17 : f32 to vector<8x8xf32>
    %20 = arith.mulf %18, %19 : vector<8x8xf32>
    %cst_18 = arith.constant dense<0xFF800000> : vector<8xf32>
    %21 = vector.multi_reduction <maximumf>, %20, %cst_18 [1] : vector<8x8xf32> to vector<8xf32>
    %22 = vector.shape_cast %21 : vector<8xf32> to vector<8x1xf32>
    %23 = vector.broadcast %22 : vector<8x1xf32> to vector<8x8xf32>
    %24 = arith.subf %20, %23 : vector<8x8xf32>
    %25 = math.exp %24 : vector<8x8xf32>
    %cst_19 = arith.constant dense<0.000000e+00> : vector<8xf32>
    %26 = vector.multi_reduction <add>, %25, %cst_19 [1] : vector<8x8xf32> to vector<8xf32>
    %27 = vector.shape_cast %26 : vector<8xf32> to vector<8x1xf32>
    %28 = vector.broadcast %27 : vector<8x1xf32> to vector<8x8xf32>
    %29 = arith.divf %25, %28 : vector<8x8xf32>
    %cst_20 = arith.constant dense<0.000000e+00> : vector<8x32xf32>
    %30 = tpu.matmul %29, %16, %cst_20 {dimension_numbers = #tpu.dot_dimension_numbers<[1], [0], [0], [1], [0, 0, 1, 1], [], []>} : vector<8x8xf32>, vector<8x32xf32>, vector<8x32xf32> -> vector<8x32xf32>
    %c0_21 = arith.constant 0 : index
    %c0_22 = arith.constant 0 : index
    %c0_23 = arith.constant 0 : index
    %31 = vector.load %arg8[%c0_21, %c0_22, %c0_23] : memref<1x8x32xf32, #tpu.memory_space<vmem>>, vector<1x8x32xf32>
    %32 = vector.shape_cast %31 : vector<1x8x32xf32> to vector<8x32xf32>
    %33 = vector.shape_cast %30 : vector<8x32xf32> to vector<1x8x32xf32>
    tpu.vector_store %arg8[%c0_21, %c0_22, %c0_23], %33 {strides = array<i32>} : memref<1x8x32xf32, #tpu.memory_space<vmem>>, vector<1x8x32xf32>,
    return
  }
  func.func @transform_0(%arg0: i32) -> (i32, i32, i32) {
    %c0_i32 = arith.constant 0 : i32
    %c0_i32_0 = arith.constant 0 : i32
    %c0_i32_1 = arith.constant 0 : i32
    return %arg0, %c0_i32, %c0_i32_0 : i32, i32, i32
  }
  func.func @transform_1(%arg0: i32) -> (i32, i32) {
    %c0_i32 = arith.constant 0 : i32
    %c0_i32_0 = arith.constant 0 : i32
    %c0_i32_1 = arith.constant 0 : i32
    return %c0_i32, %c0_i32_0 : i32, i32
  }
  func.func @transform_2(%arg0: i32) -> (i32, i32) {
    %c0_i32 = arith.constant 0 : i32
    %c0_i32_0 = arith.constant 0 : i32
    %c0_i32_1 = arith.constant 0 : i32
    return %c0_i32, %c0_i32_0 : i32, i32
  }
  func.func @transform_3(%arg0: i32) -> (i32, i32) {
    %c0_i32 = arith.constant 0 : i32
    %c0_i32_0 = arith.constant 0 : i32
    %c0_i32_1 = arith.constant 0 : i32
    return %c0_i32, %c0_i32_0 : i32, i32
  }
  func.func @transform_4(%arg0: i32) -> (i32, i32) {
    %c0_i32 = arith.constant 0 : i32
    %c0_i32_0 = arith.constant 0 : i32
    %c0_i32_1 = arith.constant 0 : i32
    return %c0_i32, %c0_i32_0 : i32, i32
  }
  func.func @transform_5(%arg0: i32) -> (i32, i32) {
    %c0_i32 = arith.constant 0 : i32
    %c0_i32_0 = arith.constant 0 : i32
    %c0_i32_1 = arith.constant 0 : i32
    return %c0_i32, %c0_i32_0 : i32, i32
  }
  func.func @transform_6(%arg0: i32) -> (i32, i32) {
    %c0_i32 = arith.constant 0 : i32
    %c0_i32_0 = arith.constant 0 : i32
    %c0_i32_1 = arith.constant 0 : i32
    return %c0_i32, %c0_i32_0 : i32, i32
  }
  func.func @transform_7(%arg0: i32) -> (i32, i32, i32) {
    %c0_i32 = arith.constant 0 : i32
    %c0_i32_0 = arith.constant 0 : i32
    %c0_i32_1 = arith.constant 0 : i32
    return %arg0, %c0_i32, %c0_i32_0 : i32, i32, i32
  }
}

</mosaic_0001>

<bundles_post_ra>
// kernel: tpu_custom_call.1
= control target key start
LH: loop header
LB: loop body
LE: loop exit
PB: predicated region body
PF: predicated region fallthrough
CT: control target
= control target key end

     0   :  { %s1484_s0 = inlined_call_operand.hbm [shape: f32[2,8,32], index: 0, kind: input, shape index: {}]   ;;  %s1485_s1 = inlined_call_operand.hbm [shape: f32[32,32], index: 1, kind: input, shape index: {}]   ;;  %s1486_s2 = inlined_call_operand.hbm [shape: f32[32,32], index: 2, kind: input, shape index: {}]   ;;  %s1487_s3 = inlined_call_operand.hbm [shape: f32[32,32], index: 3, kind: input, shape index: {}]   ;;  %s1488_s4 = inlined_call_operand.vmem [shape: f32[1,32], index: 4, kind: input, shape index: {}]   ;;  %s1489_s5 = inlined_call_operand.vmem [shape: f32[1,32], index: 5, kind: input, shape index: {}]   ;;  %s1490_s6 = inlined_call_operand.vmem [shape: f32[1,32], index: 6, kind: input, shape index: {}]   ;;  %s1491_s7 = inlined_call_operand.hbm [shape: f32[2,8,32], index: 7, kind: output, shape index: {}]  }
   0x1   :  { %1496 = sst [smem:[#allocation15_spill]] %s1485_s1 }
   0x2   :  { %1497 = sst [smem:[#allocation16_spill]] %s1486_s2 }
   0x3   :  { %12 = vsyncpa [#allocation3], 0 }
   0x4   :  { %14 = vsyncpa [#allocation3 + $0x1], 0 }
   0x5   :  { %15 = vsyncpa [#allocation6], 0 }
   0x6   :  { %16 = vsyncpa [#allocation9], 0 }
   0x7   :  { %17 = vsyncpa [#allocation4], 0 }
   0x8   :  { %19 = vsyncpa [#allocation4 + $0x1], 0  ;;  %s1265_s24 = smov 0   ;;  %s1267_s25 = smov 0  }
   0x9   :  { %s1269_s26 = smov 0   ;;  %s1271_s27 = smov 0  }
   0xa LB: > { %s1286_s28 = sadd.s32 4294967295, %s1214_s27   ;;  %s862_s29 = sadd.s32 4294967294, %s1214_s27   ;;  %s1214_s27 = sphi %s1271_s27, %s1519_s27   ;;  %s1210_s26 = sphi %s1269_s26, %s1518_s26   ;;  %s1206_s25 = sphi %s1267_s25, %s1517_s25   ;;  %s1202_s24 = sphi %s1265_s24, %s1516_s24  }
   0xb   : > { %p45_p0 = scmp.ne.s32.totalorder %s1206_s25, %s1202_s24  ;;  %p1492_p1 = scmp.eq.s32.totalorder %s1286_s28, 0 }
   0xc   : > { %p201_p3 = scmp.eq.s32.totalorder %s862_s29, 1  ;;  %p863_p5 = scmp.ge.s32.totalorder %s1214_s27, 1 }
   0xd   : > { %p1295_p4 = por %p1492_p1, %p45_p0  ;;  %p208_p7 = scmp.lt.s32.totalorder %s1214_s27, 3 }
   0xe   : > { %p1300_p6 = por %p201_p3, %p45_p0  ;;  %s1216_s10 = smov [#allocation5]  }
   0xf   : > { %s1498_s30 = scalar_select %p1295_p4, 1, 0 }
  0x10   : > { %s1499_s8 = scalar_select %p1300_p6, 1, 0 }
  0x11   : > { %p1305_p8 = pnand %p863_p5, %p208_p7  ;;  %s220_s11 = sshll.u32 %s1216_s10, 4  ;;  %s221_s11 = int_to_ptr.vmem [resolvable:$true] %s220_s11 }
  0x12   : > { %s1217_s13 = smov [#allocation7]   ;;  %s1218_s15 = smov [#allocation8]  }
  0x13   : > { %s1500_s9 = scalar_select %p1305_p8, 1, 0 }
  0x14   : > { %p967_p9 = pneg %p1305_p8  ;;  %s233_s14 = sshll.u32 %s1217_s13, 4  ;;  %s234_s14 = int_to_ptr.vmem [resolvable:$true] %s233_s14 }
  0x15   : > { %s246_s16 = sshll.u32 %s1218_s15, 4  ;;  %s1047_s17 = scalar_lea.vmem %s221_s11, 512  ;;  %s247_s16 = int_to_ptr.vmem [resolvable:$true] %s246_s16 }
  0x16   : > { %p1314_p11 = pnand %p967_p9, %p1492_p1  ;;  %p1048_p13 = scmp.ne.s32.totalorder %s221_s11, %s1047_s17 }
  0x17   : > { %p1055_p5 = scmp.lt.s32.totalorder %s221_s11, %s221_s11  ;;  %p1056_p7 = scmp.lt.s32.totalorder %s1047_s17, %s1047_s17 }
  0x18   : > { %p1038_p12 = pneg %p1314_p11 }
  0x19   : > { %p1057_p9 = por %p1056_p7, %p1055_p5 }
  0x1a   : > { %p1050_p0 = pnand %p1048_p13, %p1038_p12 }
  0x1c   : > { %p1051_p3 = pneg %p1050_p0 }
  0x1e   : > { %p1058_p10 = pnand %p1057_p9, %p1051_p3 }
  0x20   : > { %1061 = shalt.err (!%p1058_p10)
}
  0x21   : > { %s1219_s18 = smov 128   ;;  %s1220_s19 = smov 8  }
  0x22   : > { %s1502_s1 = sld [smem:[#allocation15_spill]]  ;;  %s1073_s22 = scalar_lea.vmem %s234_s14, 512 }
  0x23   : > { %p1074_p1 = scmp.ne.s32.totalorder %s234_s14, %s1073_s22  ;;  %p1081_p2 = scmp.lt.s32.totalorder %s234_s14, %s234_s14 }
  0x24   : > { %p1082_p6 = scmp.lt.s32.totalorder %s1073_s22, %s1073_s22 }
  0x25   : > { %p1076_p13 = pnand %p1074_p1, %p1038_p12 }
  0x26   : > { %p1083_p5 = por %p1082_p6, %p1081_p2 }
  0x27   : > { %p1077_p0 = pneg %p1076_p13 }
  0x28   : > { %970 = dma.hbm_to_vmem [thread:$0]  (!%p1314_p11), %s1502_s1, 512, %s221_s11, [#allocation6], %s1219_s18, %s1219_s18, %s1220_s19  }
  0x29   : > { %p1084_p3 = pnand %p1083_p5, %p1077_p0 }
  0x2b   : > { %1087 = shalt.err (!%p1084_p3)
}
  0x2c   : > { %s1503_s2 = sld [smem:[#allocation16_spill]]  ;;  %s1099_s10 = scalar_lea.vmem %s247_s16, 512 }
  0x2d   : > { %p1100_p10 = scmp.ne.s32.totalorder %s247_s16, %s1099_s10  ;;  %p1107_p9 = scmp.lt.s32.totalorder %s247_s16, %s247_s16 }
  0x2e   : > { %p1108_p13 = scmp.lt.s32.totalorder %s1099_s10, %s1099_s10 }
  0x2f   : > { %p1102_p7 = pnand %p1100_p10, %p1038_p12 }
  0x30   : > { %p1109_p4 = por %p1108_p13, %p1107_p9 }
  0x31   : > { %p1103_p1 = pneg %p1102_p7 }
  0x32   : > { %973 = dma.hbm_to_vmem [thread:$0]  (!%p1314_p11), %s1503_s2, 512, %s234_s14, [#allocation6], %s1219_s18, %s1219_s18, %s1220_s19  }
  0x33   : > { %p1110_p2 = pnand %p1109_p4, %p1103_p1 }
  0x35   : > { %1113 = shalt.err (!%p1110_p2)
}
  0x36   : > { %976 = dma.hbm_to_vmem [thread:$0]  (!%p1314_p11), %s1487_s3, 512, %s247_s16, [#allocation9], %s1219_s18, %s1219_s18, %s1220_s19  }
  0x37   : > { %s1345_s14 = sadd.s32 1, %s1214_s27   ;;  %s32_s12 = sadd.s32 1, %s1210_s26 }
  0x38   : > { %s29_s15 = ssub.s32 %s1214_s27, %s1345_s14  ;;  %p39_p6 = scmp.ne.s32.totalorder %s1210_s26, %s1206_s25 }
  0x39   : > { %p30_p4 = scmp.eq.s32.totalorder %s29_s15, 0  ;;  %p40_p12 = scmp.eq.s32.totalorder %s1214_s27, 0 }
  0x3a   : > { %p988_p0 = scmp.lt.s32.totalorder %s1214_s27, 2  ;;  %p1504_p3 = scmp.eq.s32.totalorder %s1286_s28, 1 }
  0x3b   : > { %s1355_s17 = scalar_select %p30_p4, %s1210_s26, %s32_s12  }
  0x3c   : > { %p41_p5 = por %p40_p12, %p39_p6  ;;  %p1359_p10 = por %p1504_p3, %p39_p6 }
  0x3d   : > { %s269_s21 = sand.u32 1, %s1210_s26   ;;  %s869_s22 = sshll.u32 %s1214_s27, 7 }
  0x3e   : > { %s1505_s20 = scalar_select %p1359_p10, 1, 0 }
  0x3f   : > { %s868_s16 = sshll.u32 %s269_s21, 3  ;;  %s1368_s23 = scalar_lea.hbm %s1484_s0, %s869_s22 }
  0x40   : > { %s273_s29 = scalar_lea.vmem [#allocation2], %s868_s16  ;;  %p1370_p11 = pnand %p988_p0, %p41_p5 }
  0x41   : > { %s280_s10 = sshll.u32 %s273_s29, 4  ;;  %s270_s13 = scalar_lea.sflag [#allocation3], %s269_s21  ;;  %s281_s10 = int_to_ptr.vmem [resolvable:$true] %s280_s10 }
  0x42   : > { %s1114_s15 = scalar_lea.hbm %s1368_s23, 128  ;;  %p1116_p1 = pneg %p1370_p11 }
  0x43   : > { %p1115_p7 = scmp.ne.s32.totalorder %s1368_s23, %s1114_s15  ;;  %s1119_s18 = scalar_lea.hbm %s1484_s0, 256 }
  0x44   : > { %p1120_p2 = scmp.lt.s32.totalorder %s1368_s23, %s1484_s0  ;;  %p1121_p4 = scmp.lt.s32.totalorder %s1119_s18, %s1114_s15 }
  0x45   : > { %p1117_p9 = pnand %p1116_p1, %p1115_p7 }
  0x46   : > { %p1122_p6 = por %p1121_p4, %p1120_p2 }
  0x47   : > { %p1118_p13 = pneg %p1117_p9 }
  0x49   : > { %p1123_p12 = pnand %p1122_p6, %p1118_p13 }
  0x4b   : > { %1126 = shalt.err (!%p1123_p12)
}
  0x4c   : > { %s1127_s29 = scalar_lea.vmem %s281_s10, 128  ;;  %s1221_s21 = smov [#allocation2]  }
  0x4d   : > { %p1128_p0 = scmp.ne.s32.totalorder %s281_s10, %s1127_s29  ;;  %s1132_s1 = sshll.u32 %s1221_s21, 4  ;;  %s1133_s1 = int_to_ptr.vmem [resolvable:$false] %s1132_s1 }
  0x4e   : > { %s1134_s2 = scalar_lea.vmem %s1133_s1, 256  ;;  %p1135_p7 = scmp.lt.s32.totalorder %s281_s10, %s1133_s1 }
  0x4f   : > { %p1130_p5 = pnand %p1128_p0, %p1116_p1  ;;  %p1136_p9 = scmp.lt.s32.totalorder %s1134_s2, %s1127_s29 }
  0x51   : > { %p1131_p3 = pneg %p1130_p5  ;;  %p1137_p10 = por %p1136_p9, %p1135_p7 }
  0x53   : > { %p1138_p8 = pnand %p1137_p10, %p1131_p3 }
  0x55   : > { %1141 = shalt.err (!%p1138_p8)
}
  0x56   : > { %980 = dma.hbm_to_vmem [thread:$0]  (!%p1370_p11), %s1368_s23, 128, %s281_s10, %s270_s13  }
  0x57   : > { %p1507_p13 = scmp.ne.s32.totalorder %s1500_s9, 0 }
  0x58   : > { %s1391_s15 = sand.u32 (!%p1507_p13), 1, %s1206_s25   ;;  %p1508_p8 = scmp.ne.s32.totalorder (!%p1507_p13), %s1498_s30, 0 }
  0x59   : > { %289 = sbr.rel (%p1507_p13) target bundleno = 1023 (0x3ff), region = 48  ;;  %s871_s12 = sshll.u32 (!%p1507_p13), %s1391_s15, 3 }
  0x5a   : > { %s292_s1 = scalar_lea.sflag (!%p1507_p13), [#allocation3], %s1391_s15  ;;  %s1397_s2 = scalar_lea.vmem (!%p1507_p13), [#allocation2], %s871_s12 }
  0x5e   : > { %1185 = dma.done.wait (%p1508_p8), %s292_s1, 128  }
  0x5f   : > { %1187 = vsyncadd (%p1508_p8), %s292_s1, 4294967168  ;;  %p1509_p10 = scmp.eq.s32.totalorder %s1286_s28, 0 }
  0x61   : > { %1189 = dma.done.wait (%p1509_p10), [#allocation6], 1024   ;;  %p1510_p11 = pmov %p1509_p10 }
  0x62   : > { %p1511_p1 = pmov %p1509_p10 }
  0x63   : > { %1191 = vsyncadd (%p1510_p11), [#allocation6], 4294966272 }
  0x64   : > { %1193 = dma.done.wait (%p1511_p1), [#allocation9], 512   ;;  %p1512_p2 = pmov %p1511_p1 }
  0x65   : > { %v1222_v0 = vmov 0.0   ;;  %vm1223_vm0 = vmmov 0   ;;  %v346_v1 = vld [vmem:[#allocation7 + $0x18] sm:$0xff]  ;;  %v345_v3 = vld [vmem:[#allocation7 + $0x10] sm:$0xff]  ;;  %v344_v5 = vld [vmem:[#allocation7 + $0x8] sm:$0xff]  ;;  %vm358_vm1 = vcmask 261120  }
  0x66   : > { %1195 = vsyncadd (%p1512_p2), [#allocation9], 4294966784  ;;  %919 = vmatprep.subr.mxu1 %v1222_v0  ;;  %908 = vmatprep.subr.mxu0 %v1222_v0  ;;  %v342_v2 = vld [vmem:[#allocation5 + $0x18] sm:$0xff]  ;;  %v341_v4 = vld [vmem:[#allocation5 + $0x10] sm:$0xff]  ;;  %vm663_vm2 = vcmask 64512   ;;  %s886_s22 = sshll.u32 %s1286_s28, 7 }
  0x67   : > { %927 = vmatprep.mubr.msk.f32.mxu1 %vm1223_vm0, %v1222_v0  ;;  %916 = vmatprep.mubr.msk.f32.mxu0 %vm1223_vm0, %v1222_v0  ;;  %v340_v6 = vld [vmem:[#allocation5 + $0x8] sm:$0xff]  ;;  %v343_v7 = vld [vmem:[#allocation7] sm:$0xff]  ;;  %v338_v9 = vld [vmem:[%s1397_s2] sm:$0xff]  ;;  %s337_s18 = scalar_lea.vmem [#allocation10], %s871_s12  ;;  %s1440_s21 = scalar_lea.hbm %s1491_s7, %s886_s22 }
  0x68   : > { %920 = vmatpush3.msra.mxu1 %v346_v1  ;;  %909 = vmatpush3.msra.mxu0 %v342_v2  ;;  %v339_v8 = vld [vmem:[#allocation5] sm:$0xff]  ;;  %v878_v10 = vld [vmem:[%s1489_s5] ss:$0 sm:$0xff]  ;;  %v350_v18 = vld [vmem:[#allocation8 + $0x18] sm:$0xff]  ;;  %s763_s19 = sshll.u32 %s337_s18, 4  ;;  %s750_s1 = scalar_lea.sflag [#allocation4], %s1391_s15  ;;  %s1442_s19 = int_to_ptr.vmem [resolvable:$true] %s763_s19 }
  0x69   : > { %921 = vmatprep.subr.mxu1 %v1222_v0  ;;  %910 = vmatprep.subr.mxu0 %v1222_v0  ;;  %v876_v11 = vld [vmem:[%s1488_s4] ss:$0 sm:$0xff]  ;;  %v348_v20 = vld [vmem:[#allocation8 + $0x8] sm:$0xff]  ;;  %v347_v21 = vld [vmem:[#allocation8] sm:$0xff]  ;;  %s1142_s2 = scalar_lea.vmem %s1442_s19, 128  ;;  %p1513_p6 = scmp.ne.s32.totalorder %s1505_s20, 0 }
  0x6a   : > { %922 = vmatpush3.msra.mxu1 %v345_v3  ;;  %911 = vmatpush3.msra.mxu0 %v341_v4  ;;  %v349_v19 = vld [vmem:[#allocation8 + $0x10] sm:$0xff]  ;;  %p1143_p4 = scmp.ne.s32.totalorder %s1442_s19, %s1142_s2  ;;  %s1224_s28 = smov [#allocation10]  }
  0x6b   : > { %923 = vmatprep.subr.mxu1 %v1222_v0  ;;  %912 = vmatprep.subr.mxu0 %v1222_v0  ;;  %v880_v31 = vld [vmem:[%s1490_s6] ss:$0 sm:$0xff]  ;;  %s1146_s12 = sshll.u32 %s1224_s28, 4  ;;  %s1147_s12 = int_to_ptr.vmem [resolvable:$false] %s1146_s12 }
  0x6c   : > { %924 = vmatpush3.msra.mxu1 %v344_v5  ;;  %913 = vmatpush3.msra.mxu0 %v340_v6  ;;  %p1144_p12 = pnand %p1143_p4, %p1513_p6  ;;  %s1148_s30 = scalar_lea.vmem %s1147_s12, 256 }
  0x6d   : > { %925 = vmatprep.subr.mxu1 %v1222_v0  ;;  %914 = vmatprep.subr.mxu0 %v1222_v0  ;;  %p1149_p5 = scmp.lt.s32.totalorder %s1442_s19, %s1147_s12  ;;  %p1150_p3 = scmp.lt.s32.totalorder %s1148_s30, %s1142_s2 }
  0x6e   : > { %926 = vmatpush3.msra.mxu1 %v343_v7  ;;  %915 = vmatpush3.msra.mxu0 %v339_v8  ;;  %p1145_p0 = pneg %p1144_p12 }
  0x6f   : > { %928 = vmatmul.mubr.msk.f32.vlgmr.msra.gmra.mxu1 %vm358_vm1, %v338_v9  ;;  %917 = vmatmul.mubr.msk.f32.vlgmr.msra.gmra.mxu0 %vm358_vm1, %v338_v9  ;;  %p1151_p7 = por %p1150_p3, %p1149_p5 }
  0x70   : > { %941 = vmatprep.subr.mxu1 %v1222_v0  ;;  %943 = vmatprep.mubr.msk.f32.mxu1 %vm1223_vm0, %v1222_v0 }
  0x71   : > { %930 = vmatprep.subr.mxu0 %v1222_v0  ;;  %938 = vmatprep.mubr.msk.f32.mxu0 %vm1223_vm0, %v1222_v0  ;;  %p1152_p9 = pnand %p1151_p7, %p1145_p0 }
  0x72   : > { %931 = vmatpush3.msra.mxu0 %v350_v18 }
  0x73   : > { %932 = vmatprep.subr.mxu0 %v1222_v0 }
  0x74   : > { %933 = vmatpush3.msra.mxu0 %v349_v19 }
  0x75   : > { %934 = vmatprep.subr.mxu0 %v1222_v0 }
  0x76   : > { %935 = vmatpush3.msra.mxu0 %v348_v20 }
  0x77   : > { %936 = vmatprep.subr.mxu0 %v1222_v0 }
  0x78   : > { %937 = vmatpush3.msra.mxu0 %v347_v21 }
  0x79   : > { %939 = vmatmul.mubr.msk.f32.vlgmr.msra.gmra.mxu0 %vm358_vm1, %v338_v9 }
 0x12f   : > { %v505_v12 = vpop.f32.mrf.mxu1  ;;  %v428_v13 = vpop.f32.mrf.mxu0 }
 0x130   : > { %v506_v14 = vadd.f32 %v878_v10, %v505_v12  ;;  %v429_v15 = vadd.f32 %v876_v11, %v428_v13 }
 0x131   : > { %v929_v16 = vpop.f32.mrf.mxu1  ;;  %v918_v17 = vpop.f32.mrf.mxu0 }
 0x132   : > { %942 = vmatpush3.xpose.msk.msra.mxu1 %vm358_vm1, %v506_v14 }
 0x133   : > { %946 = vmatprep.subr.mxu1 %v1222_v0 }
 0x135   : > { %944 = vmatmul.mubr.msk.f32.vlgmr.msra.gmra.mxu1 %vm358_vm1, %v429_v15 }
 0x136   : > { %948 = vmatprep.mubr.msk.f32.mxu1 %vm1223_vm0, %v1222_v0 }
 0x139   : > { %v582_v32 = vpop.f32.mrf.mxu0 }
 0x13a   : > { %v583_v33 = vadd.f32 %v880_v31, %v582_v32 }
 0x13b   : > { %v940_v34 = vpop.f32.mrf.mxu0 }
 0x13c   : > { %947 = vmatpush3.msra.mxu1 %v583_v33 }
 0x1f5   : > { %v658_v22 = vpop.f32.mrf.mxu1 }
 0x1f6   : > { %v662_v23 = vmul.f32 0.17677669, %v658_v22 }
 0x1f7   : > { %v945_v24 = vpop.f32.mrf.mxu1 }
 0x1f8   : > { %v664_v25 = vsel %vm663_vm2, %v662_v23, -inf }
 0x1f9   : > { %665 = vmax.xlane.f32.xlu0 %v664_v25 }
 0x282   : > { %v666_v26 = vpop.xlane.xlu0 %665 }
 0x283   : > { %v667_v27 = vsub.f32 %v662_v23, %v666_v26 }
 0x285   : > { %v668_v28 = vmul.f32 1.442695, %v667_v27 }
 0x287   : > { %1032 = vpow2.f32 %v668_v28 }
 0x294   : > { %v1033_v29 = vpop.eup %1032 }
 0x295   : > { %v670_v30 = vsel %vm663_vm2, %v1033_v29, 0.0 }
 0x296   : > { %671 = vadd.xlane.f32.xlu0 %v670_v30 }
 0x31f   : > { %v672_v35 = vpop.xlane.xlu0 %671 }
 0x320   : > { %1034 = vrcp.f32 %v672_v35 }
 0x32d   : > { %v1035_v36 = vpop.eup %1034 }
 0x32e   : > { %v674_v37 = vmul.f32 %v1035_v36, %v1033_v29 }
 0x330   : > { %949 = vmatmul.mubr.msk.f32.vlgmr.msra.gmra.mxu1 %vm663_vm2, %v674_v37 }
 0x3f0   : > { %v744_v38 = vpop.f32.mrf.mxu1 }
 0x3f1   : > { %748 = vst.msk [vmem:[%s337_s18] sm:$0xff] %vm358_vm1, %v744_v38 }
 0x3f2   : > { %v950_v39 = vpop.f32.mrf.mxu1 }
 0x3f3   : > { %1155 = shalt.err (!%p1152_p9)
}
 0x3f4   : > { %s1156_s9 = scalar_lea.hbm %s1440_s21, 128  ;;  %s1160_s10 = scalar_lea.hbm %s1491_s7, 256 }
 0x3f5   : > { %p1157_p13 = scmp.ne.s32.totalorder %s1440_s21, %s1156_s9  ;;  %p1161_p11 = scmp.lt.s32.totalorder %s1440_s21, %s1491_s7 }
 0x3f6   : > { %p1162_p1 = scmp.lt.s32.totalorder %s1160_s10, %s1156_s9 }
 0x3f7   : > { %p1158_p8 = pnand %p1157_p13, %p1513_p6 }
 0x3f8   : > { %p1163_p2 = por %p1162_p1, %p1161_p11 }
 0x3f9   : > { %p1159_p10 = pneg %p1158_p8 }
 0x3fb   : > { %p1164_p4 = pnand %p1163_p2, %p1159_p10 }
 0x3fd   : > { %1167 = shalt.err (!%p1164_p4)
}
 0x3fe   : > { %965 = dma.vmem_to_hbm [thread:$0]  (%p1513_p6), %s1442_s19, 128, %s1440_s21, %s750_s1  }
 0x3ff PF: > { %s775_s22 = sand.u32 1, %s1202_s24   ;;  %p1514_p12 = scmp.ne.s32.totalorder %s1499_s8, 0 }
 0x400   : > { %p1515_p0 = scmp.ge.s32.totalorder %s1214_s27, 2  ;;  %s776_s18 = scalar_lea.sflag [#allocation4], %s775_s22 }
 0x402   : > { %p982_p5 = pnand %p1515_p0, %p1514_p12 }
 0x404   : > { %p983_p3 = pneg %p982_p5 }
 0x406   : > { %1197 = dma.done.wait (%p983_p3), %s776_s18, 128  }
 0x407   : > { %1199 = vsyncadd (%p983_p3), %s776_s18, 4294967168  ;;  %p22_p7 = scmp.ge.s32.totalorder %s1345_s14, 4   ;;  %s1516_s24 = smov %s1206_s25 }
 0x408   : > { %s1517_s25 = smov %s1210_s26  ;;  %s1518_s26 = smov %s1355_s17 }
 0x409   : > { %s1519_s27 = smov %s1345_s14  ;;  %24 = sbr.rel (!%p22_p7) target bundleno = 10 (0xa), region = 105 }
 0x40e   :  { %781 = vsyncpa [#allocation3], 1 }
 0x40f   :  { %783 = vsyncpa [#allocation3 + $0x1], 1 }
 0x410   :  { %784 = vsyncpa [#allocation6], 1 }
 0x411   :  { %785 = vsyncpa [#allocation9], 1 }
 0x412   :  { %786 = vsyncpa [#allocation4], 1 }
 0x413   :  { %788 = vsyncpa [#allocation4 + $0x1], 1 }

</bundles_post_ra>
